<compile_context>
chip_gen: v7x
topology: tpu7x:2x2x1
jax: 0.10.0
libtpu: 0.0.40
codegen_flags: <defaults>
</compile_context>

<pallas_src>
import functools

import jax
import jax.numpy as jnp
from jax import lax
from jax.experimental import pallas as pl
from jax.experimental.pallas import tpu as pltpu


def _round_up(x, m):
    return ((x + m - 1) // m) * m


def _resident_spec(block_shape, index_map):
    """BlockSpec for grid-invariant (constant index_map) inputs: single-buffered."""
    try:
        return pl.BlockSpec(block_shape, index_map, pipeline_mode=pl.Buffered(1))
    except TypeError:  # older jax without pipeline_mode kwarg
        return pl.BlockSpec(block_shape, index_map)


def _vmem_cap_bytes():
    """~85% of the physical per-core VMEM (leave compiler headroom)."""
    try:
        info = pltpu.get_tpu_info()
        phys = getattr(info, "vmem_capacity_bytes", None)
        if phys:
            return int(phys * 0.85)
    except Exception:
        pass
    return 48 << 20  # conservative: fits v7x's 64 MiB per-TensorCore VMEM with headroom


def _layernorm(x, gamma, beta, eps, hidden_dim):
    """LayerNorm over the TRUE hidden dim. x is f32 with zero-valued padded lanes, so the
    sum(x)/sum(x*x) statistics are exact; padded output lanes are zeroed by the zero-padded
    gamma/beta (no lane mask needed)."""
    inv_h = 1.0 / hidden_dim
    sum_x = jnp.sum(x, axis=-1, keepdims=True)
    sum_x2 = jnp.sum(x * x, axis=-1, keepdims=True)
    mean = sum_x * inv_h
    var = sum_x2 * inv_h - mean * mean
    normed = (x - mean) * lax.rsqrt(var + eps)
    return normed * gamma + beta


def _onehot_ln_kernel(ids_ref, emb_ref, gamma_ref, beta_ref, out_ref, *, eps, hidden_dim):
    """Small-vocab fast path: exact one-hot gather on the MXU, then LayerNorm."""
    ids = ids_ref[...]                                   # (tb, 1) int32
    tb = ids.shape[0]
    v_pad = emb_ref.shape[0]
    col = lax.broadcasted_iota(jnp.int32, (tb, v_pad), 1)
    onehot = (ids == col).astype(emb_ref.dtype)          # bf16 table -> bf16 MXU rate
    x = jnp.dot(onehot, emb_ref[...], preferred_element_type=jnp.float32)   # (tb, h_pad) f32
    y = _layernorm(x, gamma_ref[...], beta_ref[...], eps, hidden_dim)
    out_ref[...] = y.astype(out_ref.dtype)


def _gather_ln_kernel(ids_smem, emb_ref, gamma_ref, beta_ref, out_ref, x_scratch, *,
                      eps, hidden_dim, token_block):
    """Gather path: scalar-prefetched ids (SMEM) index the VMEM-resident table row-by-row."""
    base = pl.program_id(0) * token_block

    def body(t, carry):
        row_id = ids_smem[base + t]                       # cheap SMEM scalar read
        row = emb_ref[pl.ds(row_id, 1), :]                # (1, h_pad) dynamic row load
        x_scratch[pl.ds(t, 1), :] = row.astype(jnp.float32)
        return carry

    lax.fori_loop(0, token_block, body, 0)

    x = x_scratch[...]                                    # (tb, h_pad) f32
    y = _layernorm(x, gamma_ref[...], beta_ref[...], eps, hidden_dim)
    out_ref[...] = y.astype(out_ref.dtype)


def transtab_word_embedding(input_ids, emb_table, gamma, beta, *,
                            layer_norm_eps=1e-5, token_block=512, out_dtype=None,
                            small_vocab_threshold=512):
    """input_ids: (B, S) int -> (B, S, H) in `out_dtype` (default: emb_table.dtype).

    Caller contract (matches nn.Embedding): 0 <= input_ids < vocab_size.
    """
    B, S = input_ids.shape
    V, H = emb_table.shape
    out_dtype = emb_table.dtype if out_dtype is None else out_dtype

    n_tok = B * S
    h_pad = _round_up(H, 128)        # lane-dense, unmasked output stores
    v_pad = _round_up(V, 128)
    use_onehot = v_pad <= small_vocab_threshold

    # Keep both v7x TensorCores busy: make sure the grid has >= 2 steps when possible.
    tb = int(token_block)
    if n_tok > 8:
        tb = min(tb, _round_up(-(-n_tok // 2), 8))
    tb = max(8, _round_up(tb, 8))
    n_tok_pad = _round_up(n_tok, tb)

    ids_flat = input_ids.reshape(n_tok).astype(jnp.int32)
    if n_tok_pad != n_tok:
        # Pad with id 0 (the module's padding_idx); padded token rows are sliced off below.
        ids_flat = jnp.pad(ids_flat, (0, n_tok_pad - n_tok))

    table = emb_table
    if (v_pad, h_pad) != (V, H):
        table = jnp.pad(table, ((0, v_pad - V), (0, h_pad - H)))
    gamma_p = jnp.pad(gamma.astype(jnp.float32), (0, h_pad - H)).reshape(1, h_pad)
    beta_p = jnp.pad(beta.astype(jnp.float32), (0, h_pad - H)).reshape(1, h_pad)

    table_isz = jnp.dtype(table.dtype).itemsize
    out_isz = jnp.dtype(out_dtype).itemsize

    # VMEM footprint (single-buffered table!) + headroom, capped below physical VMEM.
    vmem_bytes = (v_pad * h_pad * table_isz                 # resident table (1 buffer)
                  + 2 * tb * h_pad * out_isz                # double-buffered output blocks
                  + 2 * 8 * h_pad * 4                       # gamma / beta (sublane-padded)
                  + 2 * tb * h_pad * 4                      # f32 x / LN temporaries (or scratch)
                  + (2 << 20))                              # headroom
    if use_onehot:
        vmem_bytes += (2 * tb * 128 * 4                     # ids blocks (lane-padded)
                       + tb * v_pad * table_isz)            # one-hot intermediate
    vmem_limit = int(min(max(vmem_bytes, 32 << 20), _vmem_cap_bytes()))

    grid = (n_tok_pad // tb,)
    out_shape = jax.ShapeDtypeStruct((n_tok_pad, h_pad), out_dtype)
    cparams = pltpu.CompilerParams(dimension_semantics=("parallel",),
                                   vmem_limit_bytes=vmem_limit)

    if use_onehot:
        kernel = functools.partial(_onehot_ln_kernel, eps=layer_norm_eps, hidden_dim=H)
        out_flat = pl.pallas_call(
            kernel,
            out_shape=out_shape,
            grid_spec=pltpu.PrefetchScalarGridSpec(
                num_scalar_prefetch=0,
                grid=grid,
                in_specs=[
                    pl.BlockSpec((tb, 1), lambda i: (i, 0)),               # token ids
                    _resident_spec((v_pad, h_pad), lambda i: (0, 0)),       # table (resident)
                    _resident_spec((1, h_pad), lambda i: (0, 0)),           # LN gamma
                    _resident_spec((1, h_pad), lambda i: (0, 0)),           # LN beta
                ],
                out_specs=pl.BlockSpec((tb, h_pad), lambda i: (i, 0)),
            ),
            compiler_params=cparams,
        )(ids_flat.reshape(n_tok_pad, 1), table, gamma_p, beta_p)
    else:
        kernel = functools.partial(_gather_ln_kernel, eps=layer_norm_eps, hidden_dim=H,
                                   token_block=tb)
        out_flat = pl.pallas_call(
            kernel,
            out_shape=out_shape,
            grid_spec=pltpu.PrefetchScalarGridSpec(
                num_scalar_prefetch=1,                                      # ids -> SMEM
                grid=grid,
                in_specs=[
                    _resident_spec((v_pad, h_pad), lambda i, ids: (0, 0)),  # table (resident)
                    _resident_spec((1, h_pad), lambda i, ids: (0, 0)),      # LN gamma
                    _resident_spec((1, h_pad), lambda i, ids: (0, 0)),      # LN beta
                ],
                out_specs=pl.BlockSpec((tb, h_pad), lambda i, ids: (i, 0)),
                scratch_shapes=[pltpu.VMEM((tb, h_pad), jnp.float32)],      # gathered rows
            ),
            compiler_params=cparams,
        )(ids_flat, table, gamma_p, beta_p)

    return out_flat[:n_tok, :H].reshape(B, S, H)


if __name__ == "__main__":
    # Small, deterministic setup consistent with the module's __init__.
    vocab_size = 128
    hidden_dim = 32
    B, S = 2, 8
    layer_norm_eps = 1e-5

    key = jax.random.PRNGKey(0)
    k_emb, k_ids = jax.random.split(key)

    # kaiming_normal_ (fan_in mode, gain=sqrt(2)) on a (V, H) weight: std = sqrt(2/H).
    emb_table = jax.random.normal(k_emb, (vocab_size, hidden_dim), jnp.float32) * jnp.sqrt(
        2.0 / hidden_dim)
    gamma = jnp.ones((hidden_dim,), jnp.float32)
    beta = jnp.zeros((hidden_dim,), jnp.float32)

    input_ids = jax.random.randint(k_ids, (B, S), 0, vocab_size, dtype=jnp.int32)

    # Pure-JAX reference (embedding lookup + LayerNorm; dropout p=0 is identity).
    ref = emb_table[input_ids]
    mean = ref.mean(-1, keepdims=True)
    var = ((ref - mean) ** 2).mean(-1, keepdims=True)
    ref = (ref - mean) / jnp.sqrt(var + layer_norm_eps) * gamma + beta

    # Small-vocab (one-hot MXU) path.
    out_onehot = transtab_word_embedding(
        input_ids, emb_table, gamma, beta, layer_norm_eps=layer_norm_eps,
        small_vocab_threshold=512)
    out_onehot = jax.block_until_ready(out_onehot)
    assert out_onehot.shape == (B, S, hidden_dim)
    assert jnp.allclose(out_onehot, ref, atol=1e-4, rtol=1e-5)

    # Gather path (what a realistic 30k-vocab TransTab would use) forced on the same inputs.
    out_gather = transtab_word_embedding(
        input_ids, emb_table, gamma, beta, layer_norm_eps=layer_norm_eps,
        small_vocab_threshold=0)
    out_gather = jax.block_until_ready(out_gather)
    assert out_gather.shape == (B, S, hidden_dim)
    assert jnp.allclose(out_gather, ref, atol=1e-4, rtol=1e-5)

    print("KERNEL_OK")
</pallas_src>

<mosaic_0001>
module attributes {stable_mosaic.version = 11 : i64} {
  func.func @_onehot_ln_kernel(%arg0: i32, %arg1: memref<8x1xi32, #tpu.memory_space<vmem>>, %arg2: memref<128x128xf32, #tpu.memory_space<vmem>>, %arg3: memref<1x128xf32, #tpu.memory_space<vmem>>, %arg4: memref<1x128xf32, #tpu.memory_space<vmem>>, %arg5: memref<8x128xf32, #tpu.memory_space<vmem>>) attributes {dimension_semantics = [#tpu.dimension_semantics<parallel>], iteration_bounds = array<i64: 2>, scalar_prefetch = 0 : i64, scratch_operands = 0 : i64, tpu.core_type = #tpu.core_type<tc>, window_params = [{transform_indices = @transform_0, window_bounds = array<i64: 8, 1>}, {pipeline_mode = #tpu.pipeline_mode<synchronous>, transform_indices = @transform_1, window_bounds = array<i64: 128, 128>}, {pipeline_mode = #tpu.pipeline_mode<synchronous>, transform_indices = @transform_2, window_bounds = array<i64: 1, 128>}, {pipeline_mode = #tpu.pipeline_mode<synchronous>, transform_indices = @transform_3, window_bounds = array<i64: 1, 128>}, {transform_indices = @transform_4, window_bounds = array<i64: 8, 128>}]} {
    %c0 = arith.constant 0 : index
    %c0_0 = arith.constant 0 : index
    %0 = vector.load %arg1[%c0, %c0_0] : memref<8x1xi32, #tpu.memory_space<vmem>>, vector<8x1xi32>
    %1 = tpu.iota {dimensions = array<i32: 1>} : vector<8x128xi32>
    %2 = vector.broadcast %0 : vector<8x1xi32> to vector<8x128xi32>
    %3 = arith.cmpi eq, %2, %1 : vector<8x128xi32>
    %4 = arith.extui %3 : vector<8x128xi1> to vector<8x128xi32>
    %5 = arith.sitofp %4 : vector<8x128xi32> to vector<8x128xf32>
    %c0_1 = arith.constant 0 : index
    %c0_2 = arith.constant 0 : index
    %6 = vector.load %arg2[%c0_1, %c0_2] : memref<128x128xf32, #tpu.memory_space<vmem>>, vector<128x128xf32>
    %cst = arith.constant dense<0.000000e+00> : vector<8x128xf32>
    %7 = tpu.matmul %5, %6, %cst {dimension_numbers = #tpu.dot_dimension_numbers<[1], [0], [0], [1], [0, 0, 1, 1], [], []>} : vector<8x128xf32>, vector<128x128xf32>, vector<8x128xf32> -> vector<8x128xf32>
    %c0_3 = arith.constant 0 : index
    %c0_4 = arith.constant 0 : index
    %8 = vector.load %arg3[%c0_3, %c0_4] : memref<1x128xf32, #tpu.memory_space<vmem>>, vector<1x128xf32>
    %c0_5 = arith.constant 0 : index
    %c0_6 = arith.constant 0 : index
    %9 = vector.load %arg4[%c0_5, %c0_6] : memref<1x128xf32, #tpu.memory_space<vmem>>, vector<1x128xf32>
    %cst_7 = arith.constant dense<0.000000e+00> : vector<8xf32>
    %10 = vector.multi_reduction <add>, %7, %cst_7 [1] : vector<8x128xf32> to vector<8xf32>
    %11 = vector.shape_cast %10 : vector<8xf32> to vector<8x1xf32>
    %12 = arith.mulf %7, %7 : vector<8x128xf32>
    %cst_8 = arith.constant dense<0.000000e+00> : vector<8xf32>
    %13 = vector.multi_reduction <add>, %12, %cst_8 [1] : vector<8x128xf32> to vector<8xf32>
    %14 = vector.shape_cast %13 : vector<8xf32> to vector<8x1xf32>
    %cst_9 = arith.constant 3.125000e-02 : f32
    %15 = vector.broadcast %cst_9 : f32 to vector<8x1xf32>
    %16 = arith.mulf %11, %15 : vector<8x1xf32>
    %cst_10 = arith.constant 3.125000e-02 : f32
    %17 = vector.broadcast %cst_10 : f32 to vector<8x1xf32>
    %18 = arith.mulf %14, %17 : vector<8x1xf32>
    %19 = arith.mulf %16, %16 : vector<8x1xf32>
    %20 = arith.subf %18, %19 : vector<8x1xf32>
    %21 = vector.broadcast %16 : vector<8x1xf32> to vector<8x128xf32>
    %22 = arith.subf %7, %21 : vector<8x128xf32>
    %cst_11 = arith.constant 9.99999974E-6 : f32
    %23 = vector.broadcast %cst_11 : f32 to vector<8x1xf32>
    %24 = arith.addf %20, %23 : vector<8x1xf32>
    %25 = math.rsqrt %24 : vector<8x1xf32>
    %26 = vector.broadcast %25 : vector<8x1xf32> to vector<8x128xf32>
    %27 = arith.mulf %22, %26 : vector<8x128xf32>
    %28 = vector.broadcast %8 : vector<1x128xf32> to vector<8x128xf32>
    %29 = arith.mulf %27, %28 : vector<8x128xf32>
    %30 = vector.broadcast %9 : vector<1x128xf32> to vector<8x128xf32>
    %31 = arith.addf %29, %30 : vector<8x128xf32>
    %c0_12 = arith.constant 0 : index
    %c0_13 = arith.constant 0 : index
    %32 = vector.load %arg5[%c0_12, %c0_13] : memref<8x128xf32, #tpu.memory_space<vmem>>, vector<8x128xf32>
    tpu.vector_store %arg5[%c0_12, %c0_13], %31 {strides = array<i32>} : memref<8x128xf32, #tpu.memory_space<vmem>>, vector<8x128xf32>,
    return
  }
  func.func @transform_0(%arg0: i32) -> (i32, i32) {
    %c0_i32 = arith.constant 0 : i32
    %c0_i32_0 = arith.constant 0 : i32
    return %arg0, %c0_i32 : i32, i32
  }
  func.func @transform_1(%arg0: i32) -> (i32, i32) {
    %c0_i32 = arith.constant 0 : i32
    %c0_i32_0 = arith.constant 0 : i32
    %c0_i32_1 = arith.constant 0 : i32
    return %c0_i32, %c0_i32_0 : i32, i32
  }
  func.func @transform_2(%arg0: i32) -> (i32, i32) {
    %c0_i32 = arith.constant 0 : i32
    %c0_i32_0 = arith.constant 0 : i32
    %c0_i32_1 = arith.constant 0 : i32
    return %c0_i32, %c0_i32_0 : i32, i32
  }
  func.func @transform_3(%arg0: i32) -> (i32, i32) {
    %c0_i32 = arith.constant 0 : i32
    %c0_i32_0 = arith.constant 0 : i32
    %c0_i32_1 = arith.constant 0 : i32
    return %c0_i32, %c0_i32_0 : i32, i32
  }
  func.func @transform_4(%arg0: i32) -> (i32, i32) {
    %c0_i32 = arith.constant 0 : i32
    %c0_i32_0 = arith.constant 0 : i32
    return %arg0, %c0_i32 : i32, i32
  }
}

</mosaic_0001>

<bundles_post_ra>
// kernel: tpu_custom_call.1
= control target key start
LH: loop header
LB: loop body
LE: loop exit
PB: predicated region body
PF: predicated region fallthrough
CT: control target
= control target key end

     0   :  { %9 = vsyncpa [#allocation3], 0  ;;  %s841_s0 = inlined_call_operand.vmem [shape: s32[16,1], index: 0, kind: input, shape index: {}]   ;;  %s842_s1 = inlined_call_operand.hbm [shape: f32[128,128], index: 1, kind: input, shape index: {}]   ;;  %s843_s2 = inlined_call_operand.vmem [shape: f32[1,128], index: 2, kind: input, shape index: {}]   ;;  %s844_s3 = inlined_call_operand.vmem [shape: f32[1,128], index: 3, kind: input, shape index: {}]   ;;  %s845_s4 = inlined_call_operand.hbm [shape: f32[16,128], index: 4, kind: output, shape index: {}]  }
   0x1   :  { %10 = vsyncpa [#allocation4], 0 }
   0x2   :  { %12 = vsyncpa [#allocation4 + $0x1], 0  ;;  %s700_s15 = smov 0   ;;  %s702_s16 = smov 0  }
   0x3   :  { %s704_s17 = smov 0   ;;  %s706_s18 = smov 0  }
   0x4 LB: > { %s721_s19 = sadd.s32 4294967295, %s664_s18   ;;  %s418_s20 = sadd.s32 4294967294, %s664_s18   ;;  %s664_s18 = sphi %s706_s18, %s861_s18   ;;  %s660_s17 = sphi %s704_s17, %s860_s17   ;;  %s656_s16 = sphi %s702_s16, %s859_s16   ;;  %s652_s15 = sphi %s700_s15, %s858_s15  }
   0x5   : > { %s725_s21 = sadd.s32 1, %s664_s18   ;;  %s114_s22 = sadd.s32 1, %s660_s17 }
   0x6   : > { %s111_s23 = ssub.s32 %s664_s18, %s725_s21  ;;  %p124_p0 = scmp.ne.s32.totalorder %s660_s17, %s656_s16 }
   0x7   : > { %p112_p1 = scmp.eq.s32.totalorder %s111_s23, 0  ;;  %p125_p2 = scmp.eq.s32.totalorder %s721_s19, 1 }
   0x8   : > { %p130_p3 = scmp.ne.s32.totalorder %s656_s16, %s652_s15  ;;  %p131_p4 = scmp.eq.s32.totalorder %s418_s20, 1 }
   0x9   : > { %s736_s24 = scalar_select %p112_p1, %s660_s17, %s114_s22  }
   0xa   : > { %p738_p5 = por %p125_p2, %p124_p0  ;;  %p742_p6 = por %p131_p4, %p130_p3 }
   0xb   : > { %p419_p7 = scmp.ge.s32.totalorder %s664_s18, 1  ;;  %p138_p8 = scmp.lt.s32.totalorder %s664_s18, 3 }
   0xc   : > { %s849_s25 = scalar_select %p738_p5, 1, 0 }
   0xd   : > { %s850_s26 = scalar_select %p742_p6, 1, 0 }
   0xe   : > { %p846_p9 = scmp.eq.s32.totalorder %s721_s19, 0  ;;  %p749_p10 = pnand %p419_p7, %p138_p8 }
   0xf   : > { %s666_s28 = smov [#allocation2]   ;;  %s570_s7 = scalar_lea.hbm %s842_s1, 2048 }
  0x10   : > { %s851_s27 = scalar_select %p749_p10, 1, 0 }
  0x11   : > { %s150_s29 = sshll.u32 %s666_s28, 4  ;;  %p516_p11 = pneg %p749_p10  ;;  %s151_s29 = int_to_ptr.vmem [resolvable:$true] %s150_s29 }
  0x12   : > { %p571_p13 = scmp.ne.s32.totalorder %s842_s1, %s570_s7  ;;  %p577_p3 = scmp.lt.u32.totalorder %s570_s7, %s842_s1 }
  0x13   : > { %p757_p12 = pnand %p846_p9, %p516_p11 }
  0x15   : > { %p572_p0 = pneg %p757_p12 }
  0x17   : > { %p573_p1 = pnand %p572_p0, %p571_p13 }
  0x19   : > { %p574_p2 = pneg %p573_p1 }
  0x1b   : > { %p579_p4 = pnand %p577_p3, %p574_p2 }
  0x1d   : > { %582 = shalt.err (!%p579_p4)
}
  0x1e   : > { %s583_s12 = scalar_lea.vmem %s151_s29, 2048  ;;  %p591_p9 = scmp.lt.s32.totalorder %s151_s29, %s151_s29 }
  0x1f   : > { %p584_p7 = scmp.ne.s32.totalorder %s151_s29, %s583_s12  ;;  %p592_p6 = scmp.lt.s32.totalorder %s583_s12, %s583_s12 }
  0x21   : > { %p586_p8 = pnand %p584_p7, %p572_p0  ;;  %p593_p5 = por %p592_p6, %p591_p9 }
  0x23   : > { %p587_p11 = pneg %p586_p8 }
  0x25   : > { %p594_p10 = pnand %p593_p5, %p587_p11 }
  0x27   : > { %597 = shalt.err (!%p594_p10)
}
  0x28   : > { %s667_s13 = smov 128   ;;  %s668_s14 = smov 8  }
  0x29   : > { %519 = dma.hbm_to_vmem [thread:$0]  (!%p757_p12), %s842_s1, 2048, %s151_s29, [#allocation3], %s667_s13, %s667_s13, %s668_s14  }
  0x2a   : > { %p853_p13 = scmp.ne.s32.totalorder %s851_s27, 0 }
  0x2b   : > { %p854_p1 = scmp.eq.s32.totalorder (!%p853_p13), %s721_s19, 0 }
  0x2c   : > { %179 = sbr.rel (%p853_p13) target bundleno = 581 (0x245), region = 36 }
  0x33   : > { %643 = dma.done.wait (%p854_p1), [#allocation3], 2048   ;;  %p855_p0 = pmov %p854_p1 }
  0x34   : > { %p204_p5 = scmp.lt.s32.totalorder %s721_s19, 1  ;;  %v669_v0 = vmov 0   ;;  %v670_v1 = vmov 0.0|0.0   ;;  %v217_v3 = vld [vmem:[#allocation2] sm:$0xff]  ;;  %v218_v4 = vld [vmem:[#allocation2 + $0x8] sm:$0xff]  ;;  %v219_v6 = vld [vmem:[#allocation2 + $0x10] sm:$0xff]  ;;  %v209_v28 = vlaneseq }
  0x35   : > { %645 = vsyncadd (%p855_p0), [#allocation3], 4294965248  ;;  %567 = vset.pattern.permute.xlu0 %v669_v0  ;;  %486 = vmatprep.subr.bf16.mxu0 %v670_v1  ;;  %v487_v5 = vpack.c.bf16 %v218_v4, %v217_v3  ;;  %v220_v7 = vld [vmem:[#allocation2 + $0x18] sm:$0xff]  ;;  %vm671_vm0 = vmmov 0   ;;  %v672_v8 = vmov 0.0   ;;  %v221_v10 = vld [vmem:[#allocation2 + $0x20] sm:$0xff] }
  0x36   : > { %s205_s23 = scalar_select %p204_p5, %s721_s19, 1  ;;  %483 = vmatprep.mubr.msk.f32.mxu0 %vm671_vm0, %v672_v8  ;;  %v490_v9 = vpack.c.bf16 %v220_v7, %v219_v6  ;;  %v222_v11 = vld [vmem:[#allocation2 + $0x28] sm:$0xff]  ;;  %v223_v13 = vld [vmem:[#allocation2 + $0x30] sm:$0xff]  ;;  %v224_v14 = vld [vmem:[#allocation2 + $0x38] sm:$0xff]  ;;  %v210_v29 = vand.u32 127, %v209_v28  ;;  %v673_v31 = vmov 1.0  }
  0x37   : > { %488 = vmatpush3.bf16.msra.mxu0 %v487_v5  ;;  %v493_v12 = vpack.c.bf16 %v222_v11, %v221_v10  ;;  %v496_v15 = vpack.c.bf16 %v224_v14, %v223_v13  ;;  %v225_v16 = vld [vmem:[#allocation2 + $0x40] sm:$0xff]  ;;  %v226_v17 = vld [vmem:[#allocation2 + $0x48] sm:$0xff]  ;;  %v227_v19 = vld [vmem:[#allocation2 + $0x50] sm:$0xff]  ;;  %s201_s5 = sand.u32 1, %s656_s16   ;;  %s431_s11 = sshll.u32 %s721_s19, 7 }
  0x38   : > { %s425_s28 = sshll.u32 %s205_s23, 3  ;;  %489 = vmatprep.subr.bf16.mxu0 %v670_v1  ;;  %v499_v18 = vpack.c.bf16 %v226_v17, %v225_v16  ;;  %v228_v20 = vld [vmem:[#allocation2 + $0x58] sm:$0xff]  ;;  %v229_v22 = vld [vmem:[#allocation2 + $0x60] sm:$0xff]  ;;  %v230_v23 = vld [vmem:[#allocation2 + $0x68] sm:$0xff]  ;;  %s424_s6 = sshll.u32 %s201_s5, 3 }
  0x39   : > { %s207_s27 = scalar_lea.vmem %s841_s0, %s425_s28  ;;  %v502_v21 = vpack.c.bf16 %v228_v20, %v227_v19  ;;  %v505_v24 = vpack.c.bf16 %v230_v23, %v229_v22  ;;  %v231_v25 = vld [vmem:[#allocation2 + $0x70] sm:$0xff]  ;;  %v232_v26 = vld [vmem:[#allocation2 + $0x78] sm:$0xff]  ;;  %s203_s12 = scalar_lea.vmem [#allocation5], %s424_s6 }
  0x3a   : > { %v208_v2 = vld [vmem:[%s207_s27] sm:$0xff]  ;;  %v508_v27 = vpack.c.bf16 %v232_v26, %v231_v25  ;;  %s347_s13 = sshll.u32 %s203_s12, 4  ;;  %s799_s22 = scalar_lea.hbm %s845_s4, %s431_s11  ;;  %s801_s13 = int_to_ptr.vmem [resolvable:$true] %s347_s13 }
  0x3b   : > { %212 = vperm.xlu0 %567, %v208_v2   ;;  %491 = vmatpush3.bf16.msra.mxu0 %v490_v9  ;;  %v428_v44 = vld [vmem:[%s843_s2] ss:$0 sm:$0xff]  ;;  %s334_s23 = scalar_lea.sflag [#allocation4], %s201_s5  ;;  %s598_s28 = scalar_lea.vmem %s801_s13, 128 }
  0x3c   : > { %492 = vmatprep.subr.bf16.mxu0 %v670_v1  ;;  %v429_v46 = vld [vmem:[%s844_s3] ss:$0 sm:$0xff]  ;;  %p599_p6 = scmp.ne.s32.totalorder %s801_s13, %s598_s28  ;;  %p856_p9 = scmp.ne.s32.totalorder %s849_s25, 0 }
  0x3d   : > { %s674_s19 = smov [#allocation5]  }
  0x3e   : > { %p600_p10 = pnand %p599_p6, %p856_p9  ;;  %s602_s30 = sshll.u32 %s674_s19, 4  ;;  %s603_s30 = int_to_ptr.vmem [resolvable:$false] %s602_s30 }
  0x3f   : > { %494 = vmatpush3.bf16.msra.mxu0 %v493_v12  ;;  %s604_s29 = scalar_lea.vmem %s603_s30, 256  ;;  %p605_p2 = scmp.lt.s32.totalorder %s801_s13, %s603_s30 }
  0x40   : > { %495 = vmatprep.subr.bf16.mxu0 %v670_v1  ;;  %p601_p12 = pneg %p600_p10  ;;  %p606_p3 = scmp.lt.s32.totalorder %s604_s29, %s598_s28 }
  0x42   : > { %p607_p4 = por %p606_p3, %p605_p2 }
  0x43   : > { %497 = vmatpush3.bf16.msra.mxu0 %v496_v15 }
  0x44   : > { %498 = vmatprep.subr.bf16.mxu0 %v670_v1  ;;  %p608_p7 = pnand %p607_p4, %p601_p12 }
  0x47   : > { %500 = vmatpush3.bf16.msra.mxu0 %v499_v18 }
  0x48   : > { %501 = vmatprep.subr.bf16.mxu0 %v670_v1 }
  0x4b   : > { %503 = vmatpush3.bf16.msra.mxu0 %v502_v21 }
  0x4c   : > { %504 = vmatprep.subr.bf16.mxu0 %v670_v1 }
  0x4f   : > { %506 = vmatpush3.bf16.msra.mxu0 %v505_v24 }
  0x50   : > { %507 = vmatprep.subr.bf16.mxu0 %v670_v1 }
  0x53   : > { %509 = vmatpush3.bf16.msra.mxu0 %v508_v27 }
  0xba   : > { %v213_v30 = vpop.permute.xlu0 %212 }
  0xbb   : > { %vm214_vm1 = vcmp.eq.s32.totalorder %v213_v30, %v210_v29 }
  0xbc   : > { %484 = vmatmul.mubr.msk.f32.vlgmr.msra.gmra.mrb[0].mxu0 %vm214_vm1, %v673_v31 }
 0x18f   : > { %v299_v32 = vpop.f32.mrb[0].mxu0 }
 0x190   : > { %305 = vadd.xlane.f32.xlu0 %v299_v32  ;;  %v485_v33 = vpop.f32.mrb[1].mxu0  ;;  %v307_v34 = vmul.f32 %v299_v32, %v299_v32 }
 0x192   : > { %308 = vadd.xlane.f32.xlu1 %v307_v34 }
 0x21d   : > { %v306_v35 = vpop.xlane.xlu0 %305 }
 0x21e   : > { %v310_v36 = vmul.f32 0.03125, %v306_v35 }
 0x21f   : > { %v309_v37 = vpop.xlane.xlu1 %308 }
 0x220   : > { %v312_v38 = vmul.f32 %v310_v36, %v310_v36  ;;  %v311_v39 = vmul.f32 0.03125, %v309_v37  ;;  %v314_v42 = vsub.f32 %v299_v32, %v310_v36 }
 0x222   : > { %v313_v40 = vsub.f32 %v311_v39, %v312_v38 }
 0x224   : > { %v315_v41 = vadd.f32 1e-05, %v313_v40 }
 0x226   : > { %568 = vrsqrt.f32 %v315_v41 }
 0x230   : > { %v569_v43 = vpop.eup %568 }
 0x231   : > { %v317_v45 = vmul.f32 %v569_v43, %v314_v42 }
 0x233   : > { %v324_v47 = vmul.f32 %v428_v44, %v317_v45 }
 0x235   : > { %v331_v48 = vadd.f32 %v429_v46, %v324_v47 }
 0x237   : > { %332 = vst [vmem:[%s203_s12] sm:$0xff] %v331_v48 }
 0x238   : > { %611 = shalt.err (!%p608_p7)
}
 0x239   : > { %s612_s27 = scalar_lea.hbm %s799_s22, 128  ;;  %s616_s7 = scalar_lea.hbm %s845_s4, 256 }
 0x23a   : > { %p613_p8 = scmp.ne.s32.totalorder %s799_s22, %s612_s27  ;;  %p617_p1 = scmp.lt.u32.totalorder %s799_s22, %s845_s4 }
 0x23b   : > { %p618_p0 = scmp.lt.u32.totalorder %s616_s7, %s612_s27  ;;  %p620_p6 = scmp.lt.u32.totalorder %s612_s27, %s799_s22 }
 0x23c   : > { %p614_p11 = pnand %p613_p8, %p856_p9 }
 0x23d   : > { %p619_p5 = por %p618_p0, %p617_p1 }
 0x23e   : > { %p615_p13 = pneg %p614_p11 }
 0x23f   : > { %p621_p10 = por %p620_p6, %p619_p5 }
 0x241   : > { %p622_p12 = pnand %p621_p10, %p615_p13 }
 0x243   : > { %625 = shalt.err (!%p622_p12)
}
 0x244   : > { %514 = dma.vmem_to_hbm [thread:$0]  (%p856_p9), %s801_s13, 128, %s799_s22, %s334_s23  }
 0x245 PF: > { %p526_p2 = scmp.ge.s32.totalorder %s664_s18, 2  ;;  %s359_s10 = sand.u32 1, %s652_s15  }
 0x246   : > { %p857_p3 = scmp.ne.s32.totalorder %s850_s26, 0  ;;  %s360_s11 = scalar_lea.sflag [#allocation4], %s359_s10 }
 0x248   : > { %p521_p4 = pnand %p526_p2, %p857_p3 }
 0x24a   : > { %647 = dma.done.wait (!%p521_p4), %s360_s11, 128  }
 0x24b   : > { %649 = vsyncadd (!%p521_p4), %s360_s11, 4294967168  ;;  %p15_p7 = scmp.ge.s32.totalorder %s725_s21, 4   ;;  %s858_s15 = smov %s656_s16 }
 0x24c   : > { %s859_s16 = smov %s660_s17  ;;  %s860_s17 = smov %s736_s24 }
 0x24d   : > { %s861_s18 = smov %s725_s21  ;;  %17 = sbr.rel (!%p15_p7) target bundleno = 4 (0x4), region = 76 }
 0x254   :  { %365 = vsyncpa [#allocation3], 1 }
 0x255   :  { %367 = vsyncpa [#allocation3 + $0x1], 1 }
 0x256   :  { %368 = vsyncpa [#allocation4], 1 }
 0x257   :  { %370 = vsyncpa [#allocation4 + $0x1], 1 }

</bundles_post_ra>
